<compile_context>
chip_gen: v7x
topology: tpu7x:2x2x1
jax: 0.10.0
libtpu: 0.0.40
codegen_flags: <defaults>
</compile_context>

<pallas_src>
import jax
import jax.numpy as jnp
from jax import lax
from jax.experimental import pallas as pl
from jax.experimental.pallas import tpu as pltpu

KH = KW = 3  # kernel_size=3, padding=1 (same-padding conv)


def _conv_rows_kernel(x_ref, w_ref, b_ref, o_ref):
    # x_ref: (1, TH+2, (W+2)*Cin)   row-window of the zero-padded NHWC image
    # w_ref: (KH, (W+2)*Cin, W*Cout) banded per-row-tap weights (grid-invariant)
    # b_ref: (1, W*Cout)             bias tiled along W (grid-invariant)
    # o_ref: (1, TH, W*Cout)         dense output rows (lane-dense store)
    th = o_ref.shape[1]
    acc = jnp.dot(x_ref[0, 0:th, :], w_ref[0],
                  preferred_element_type=jnp.float32)
    acc = acc + jnp.dot(x_ref[0, 1:th + 1, :], w_ref[1],
                        preferred_element_type=jnp.float32)
    acc = acc + jnp.dot(x_ref[0, 2:th + 2, :], w_ref[2],
                        preferred_element_type=jnp.float32)
    o_ref[0] = (acc + b_ref[...]).astype(o_ref.dtype)


def _banded_weights(w, W):
    """Fold KW width-taps + Cin into banded matmul weights.

    w: (Cout, Cin, KH, KW) -> (KH, (W+2)*Cin, W*Cout) with
    out[i, win*Cin + c, wout*Cout + co] = w[co, c, i, win - wout]
    (zero when the width tap win - wout is outside [0, KW)).
    """
    Cout, Cin = w.shape[0], w.shape[1]
    RL = (W + 2) * Cin
    w_ijco = jnp.transpose(w, (2, 3, 1, 0))                 # (KH, KW, Cin, Cout)
    r = jnp.arange(RL)
    win = r // Cin                                          # padded width index
    c = r % Cin
    wout = jnp.arange(W)
    j = win[None, :] - wout[:, None]                        # (W, RL) width tap
    valid = (j >= 0) & (j < KW)
    j_c = jnp.clip(j, 0, KW - 1)
    c_b = jnp.broadcast_to(c[None, :], (W, RL))
    wg = w_ijco[:, j_c, c_b, :]                             # (KH, W, RL, Cout)
    wg = jnp.where(valid[None, :, :, None], wg, 0.0)
    return jnp.transpose(wg, (0, 2, 1, 3)).reshape(KH, RL, W * Cout)


def _pick_row_tiling(N, H, RL, WCo, itemsize, step_byte_budget=512 * 1024):
    """Rows per block (TH) and blocks per image (nb): big steps, even grid."""
    bytes_per_row = itemsize * (RL + WCo)
    target = max(8, min(H, step_byte_budget // max(bytes_per_row, 1)))
    nb = max(1, -(-H // target))
    if N * nb < 2 and H > 1:          # >= 2 grid steps so megacore can help
        nb = min(H, 2)
    if (N * nb) % 2 == 1 and nb < H:  # even grid keeps both v7x TCs busy
        nb += 1
    th = -(-H // nb)
    return th, nb


def cross_conv2d(x_nchw, v, g, bias, *, use_bf16=False):
    """Forward pass of CrossConv2d (weight-norm Conv2d, k=3, padding=1).

    x_nchw: (N, Cin, H, W) float32
    v:      (Cout, Cin, KH, KW)  weight_norm direction tensor
    g:      (Cout, 1, 1, 1)      weight_norm magnitude
    bias:   (Cout,)
    returns (N, Cout, H, W)
    """
    N, Cin, H, W = x_nchw.shape
    Cout = v.shape[0]
    RL = (W + 2) * Cin          # flattened padded-row length (contraction dim)
    WCo = W * Cout              # flattened output-row length (lane dim)

    # --- weight_norm (PyTorch default dim=0): w = g * v / ||v||_{Cin,KH,KW} ---
    norm = jnp.sqrt(jnp.sum(v * v, axis=(1, 2, 3), keepdims=True))
    w = g * v / norm                                        # (Cout, Cin, KH, KW)
    w_band = _banded_weights(w, W)                          # (KH, RL, WCo)
    b_row = jnp.tile(bias, W).reshape(1, WCo)               # bias[co] at w*Cout+co

    # --- dense padded rows + overlapping row windows (no 9x im2col in HBM) ---
    compute_dtype = jnp.bfloat16 if use_bf16 else x_nchw.dtype
    x_nhwc = jnp.transpose(x_nchw, (0, 2, 3, 1))            # (N, H, W, Cin)
    x_pad = jnp.pad(x_nhwc, ((0, 0), (1, 1), (1, 1), (0, 0)))
    x_rows = x_pad.reshape(N, H + 2, RL)                    # row -> dense vector

    th, nb = _pick_row_tiling(N, H, RL, WCo, jnp.dtype(compute_dtype).itemsize)
    h_pad = nb * th
    x_rows = jnp.pad(x_rows, ((0, 0), (0, h_pad - H), (0, 0)))  # (N, h_pad+2, RL)
    # Window b needs padded rows [b*th, b*th + th + 2): only ~2/th duplication.
    idx = jnp.arange(nb)[:, None] * th + jnp.arange(th + 2)[None, :]
    x_win = x_rows[:, idx, :].reshape(N * nb, th + 2, RL)

    x_win = x_win.astype(compute_dtype)
    w_band = w_band.astype(compute_dtype)

    out_rows = pl.pallas_call(
        _conv_rows_kernel,
        out_shape=jax.ShapeDtypeStruct((N * nb, th, WCo), jnp.float32),
        grid=(N * nb,),
        in_specs=[
            pl.BlockSpec((1, th + 2, RL), lambda b: (b, 0, 0)),
            pl.BlockSpec((KH, RL, WCo), lambda b: (0, 0, 0)),   # grid-invariant
            pl.BlockSpec((1, WCo), lambda b: (0, 0)),
        ],
        out_specs=pl.BlockSpec((1, th, WCo), lambda b: (b, 0, 0)),
        compiler_params=pltpu.CompilerParams(
            dimension_semantics=("parallel",),
            vmem_limit_bytes=32 * 1024 * 1024,   # safe on v5e/v6e and v7x 64 MiB
        ),
    )(x_win, w_band, b_row)

    # TODO(synk): for large W*Cin*Cout, also tile the width dim (1-px halo) so the
    # banded weight stays a few MiB, or fall back to per-tap (Cin,Cout) matmuls.
    out = out_rows.reshape(N, h_pad, W, Cout)[:, :H]         # strip row padding
    # NCHW to match nn.Conv2d; skip this transpose if the consumer accepts NHWC.
    return jnp.transpose(out, (0, 3, 1, 2))


if __name__ == "__main__":
    # Small deterministic example consistent with CrossConv2d(4, 8).
    N, Cin, Cout, H, W = 2, 4, 8, 16, 16

    key = jax.random.PRNGKey(0)
    kx, kv, kg, kb = jax.random.split(key, 4)
    x = jax.random.normal(kx, (N, Cin, H, W), dtype=jnp.float32)
    v = jax.random.normal(kv, (Cout, Cin, KH, KW), dtype=jnp.float32) * 0.1
    g = jax.random.normal(kg, (Cout, 1, 1, 1), dtype=jnp.float32)
    b = jax.random.normal(kb, (Cout,), dtype=jnp.float32) * 0.1

    out = jax.block_until_ready(jax.jit(cross_conv2d)(x, v, g, b))

    # Reference check (plain XLA conv) to validate the weight-norm conv semantics.
    norm = jnp.sqrt(jnp.sum(v * v, axis=(1, 2, 3), keepdims=True))
    w = g * v / norm
    ref = lax.conv_general_dilated(
        x, w, window_strides=(1, 1), padding=((1, 1), (1, 1)),
        dimension_numbers=("NCHW", "OIHW", "NCHW"),
    ) + b.reshape(1, Cout, 1, 1)

    assert out.shape == (N, Cout, H, W)
    assert jnp.allclose(out, ref, atol=1e-4, rtol=1e-4)
    print("KERNEL_OK")
</pallas_src>

<mosaic_0001>
module attributes {stable_mosaic.version = 11 : i64} {
  func.func @_conv_rows_kernel(%arg0: i32, %arg1: memref<1x18x72xf32, #tpu.memory_space<vmem>>, %arg2: memref<3x72x128xf32, #tpu.memory_space<vmem>>, %arg3: memref<1x128xf32, #tpu.memory_space<vmem>>, %arg4: memref<1x16x128xf32, #tpu.memory_space<vmem>>) attributes {dimension_semantics = [#tpu.dimension_semantics<parallel>], iteration_bounds = array<i64: 2>, scalar_prefetch = 0 : i64, scratch_operands = 0 : i64, tpu.core_type = #tpu.core_type<tc>, window_params = [{transform_indices = @transform_0, window_bounds = array<i64: 1, 18, 72>}, {pipeline_mode = #tpu.pipeline_mode<synchronous>, transform_indices = @transform_1, window_bounds = array<i64: 3, 72, 128>}, {pipeline_mode = #tpu.pipeline_mode<synchronous>, transform_indices = @transform_2, window_bounds = array<i64: 1, 128>}, {transform_indices = @transform_3, window_bounds = array<i64: 1, 16, 128>}]} {
    %c0 = arith.constant 0 : index
    %c0_0 = arith.constant 0 : index
    %c0_1 = arith.constant 0 : index
    %0 = vector.load %arg1[%c0, %c0_0, %c0_1] : memref<1x18x72xf32, #tpu.memory_space<vmem>>, vector<1x16x72xf32>
    %1 = vector.shape_cast %0 : vector<1x16x72xf32> to vector<16x72xf32>
    %c0_2 = arith.constant 0 : index
    %c0_3 = arith.constant 0 : index
    %c0_4 = arith.constant 0 : index
    %2 = vector.load %arg2[%c0_2, %c0_3, %c0_4] : memref<3x72x128xf32, #tpu.memory_space<vmem>>, vector<1x72x128xf32>
    %3 = vector.shape_cast %2 : vector<1x72x128xf32> to vector<72x128xf32>
    %cst = arith.constant dense<0.000000e+00> : vector<16x128xf32>
    %4 = tpu.matmul %1, %3, %cst {dimension_numbers = #tpu.dot_dimension_numbers<[1], [0], [0], [1], [0, 0, 1, 1], [], []>} : vector<16x72xf32>, vector<72x128xf32>, vector<16x128xf32> -> vector<16x128xf32>
    %c0_5 = arith.constant 0 : index
    %c1 = arith.constant 1 : index
    %c0_6 = arith.constant 0 : index
    %5 = vector.load %arg1[%c0_5, %c1, %c0_6] : memref<1x18x72xf32, #tpu.memory_space<vmem>>, vector<1x16x72xf32>
    %6 = vector.shape_cast %5 : vector<1x16x72xf32> to vector<16x72xf32>
    %c1_7 = arith.constant 1 : index
    %c0_8 = arith.constant 0 : index
    %c0_9 = arith.constant 0 : index
    %7 = vector.load %arg2[%c1_7, %c0_8, %c0_9] : memref<3x72x128xf32, #tpu.memory_space<vmem>>, vector<1x72x128xf32>
    %8 = vector.shape_cast %7 : vector<1x72x128xf32> to vector<72x128xf32>
    %cst_10 = arith.constant dense<0.000000e+00> : vector<16x128xf32>
    %9 = tpu.matmul %6, %8, %cst_10 {dimension_numbers = #tpu.dot_dimension_numbers<[1], [0], [0], [1], [0, 0, 1, 1], [], []>} : vector<16x72xf32>, vector<72x128xf32>, vector<16x128xf32> -> vector<16x128xf32>
    %10 = arith.addf %4, %9 : vector<16x128xf32>
    %c0_11 = arith.constant 0 : index
    %c2 = arith.constant 2 : index
    %c0_12 = arith.constant 0 : index
    %11 = vector.load %arg1[%c0_11, %c2, %c0_12] : memref<1x18x72xf32, #tpu.memory_space<vmem>>, vector<1x16x72xf32>
    %12 = vector.shape_cast %11 : vector<1x16x72xf32> to vector<16x72xf32>
    %c2_13 = arith.constant 2 : index
    %c0_14 = arith.constant 0 : index
    %c0_15 = arith.constant 0 : index
    %13 = vector.load %arg2[%c2_13, %c0_14, %c0_15] : memref<3x72x128xf32, #tpu.memory_space<vmem>>, vector<1x72x128xf32>
    %14 = vector.shape_cast %13 : vector<1x72x128xf32> to vector<72x128xf32>
    %cst_16 = arith.constant dense<0.000000e+00> : vector<16x128xf32>
    %15 = tpu.matmul %12, %14, %cst_16 {dimension_numbers = #tpu.dot_dimension_numbers<[1], [0], [0], [1], [0, 0, 1, 1], [], []>} : vector<16x72xf32>, vector<72x128xf32>, vector<16x128xf32> -> vector<16x128xf32>
    %16 = arith.addf %10, %15 : vector<16x128xf32>
    %c0_17 = arith.constant 0 : index
    %c0_18 = arith.constant 0 : index
    %17 = vector.load %arg3[%c0_17, %c0_18] : memref<1x128xf32, #tpu.memory_space<vmem>>, vector<1x128xf32>
    %18 = vector.broadcast %17 : vector<1x128xf32> to vector<16x128xf32>
    %19 = arith.addf %16, %18 : vector<16x128xf32>
    %c0_19 = arith.constant 0 : index
    %c0_20 = arith.constant 0 : index
    %c0_21 = arith.constant 0 : index
    %20 = vector.load %arg4[%c0_19, %c0_20, %c0_21] : memref<1x16x128xf32, #tpu.memory_space<vmem>>, vector<1x16x128xf32>
    %21 = vector.shape_cast %20 : vector<1x16x128xf32> to vector<16x128xf32>
    %22 = vector.shape_cast %19 : vector<16x128xf32> to vector<1x16x128xf32>
    tpu.vector_store %arg4[%c0_19, %c0_20, %c0_21], %22 {strides = array<i32>} : memref<1x16x128xf32, #tpu.memory_space<vmem>>, vector<1x16x128xf32>,
    return
  }
  func.func @transform_0(%arg0: i32) -> (i32, i32, i32) {
    %c0_i32 = arith.constant 0 : i32
    %c0_i32_0 = arith.constant 0 : i32
    %c0_i32_1 = arith.constant 0 : i32
    return %arg0, %c0_i32, %c0_i32_0 : i32, i32, i32
  }
  func.func @transform_1(%arg0: i32) -> (i32, i32, i32) {
    %c0_i32 = arith.constant 0 : i32
    %c0_i32_0 = arith.constant 0 : i32
    %c0_i32_1 = arith.constant 0 : i32
    %c0_i32_2 = arith.constant 0 : i32
    return %c0_i32, %c0_i32_0, %c0_i32_1 : i32, i32, i32
  }
  func.func @transform_2(%arg0: i32) -> (i32, i32) {
    %c0_i32 = arith.constant 0 : i32
    %c0_i32_0 = arith.constant 0 : i32
    %c0_i32_1 = arith.constant 0 : i32
    return %c0_i32, %c0_i32_0 : i32, i32
  }
  func.func @transform_3(%arg0: i32) -> (i32, i32, i32) {
    %c0_i32 = arith.constant 0 : i32
    %c0_i32_0 = arith.constant 0 : i32
    %c0_i32_1 = arith.constant 0 : i32
    return %arg0, %c0_i32, %c0_i32_0 : i32, i32, i32
  }
}

</mosaic_0001>

<bundles_post_ra>
// kernel: tile.8
= control target key start
LH: loop header
LB: loop body
LE: loop exit
PB: predicated region body
PF: predicated region fallthrough
CT: control target
= control target key end

     0   :  { %s28_s0 = inlined_call_operand.vmem [shape: f32[8], index: 0, kind: input, shape index: {}]   ;;  %s29_s1 = inlined_call_operand.vmem [shape: f32[16,8], index: 1, kind: output, shape index: {}]  }
   0x1   :  { %v4_v0 = vld [vmem:[%s28_s0] ss:$0 sm:$0xff] }
   0x2   :  { %5 = vst [vmem:[%s29_s1] sm:$0xff] %v4_v0  ;;  %8 = vst [vmem:[%s29_s1 + $0x8] sm:$0xff] %v4_v0 }

// kernel: tile.9
= control target key start
LH: loop header
LB: loop body
LE: loop exit
PB: predicated region body
PF: predicated region fallthrough
CT: control target
= control target key end

     0   :  { %s131_s10 = smov 120   ;;  %s132_s11 = smov 104   ;;  %vm3_vm0 = vcmask 64512   ;;  %vm9_vm1 = vcmask 1048512   ;;  %vm15_vm2 = vcmask 982912   ;;  %vm21_vm3 = vcmask 917312   ;;  %s207_s0 = inlined_call_operand.vmem [shape: f32[16,8], index: 0, kind: input, shape index: {}]   ;;  %s208_s1 = inlined_call_operand.vmem [shape: f32[1,128], index: 1, kind: output, shape index: {}]  }
   0x1   :  { %v101_v0 = vld [vmem:[%s207_s0 + $0xf] sm:$0x1]   ;;  %v103_v1 = vld [vmem:[%s207_s0 + $0xd] sm:$0x1]   ;;  %v102_v2 = vld [vmem:[%s207_s0 + $0xe] sm:$0x1]  }
   0x2   :  { %7 = vrot.lane.b32.xlu0 %v101_v0, %s131_s10  ;;  %19 = vrot.lane.b32.xlu1 %v103_v1, %s132_s11  ;;  %v104_v3 = vld [vmem:[%s207_s0 + $0xc] sm:$0x1]   ;;  %s133_s16 = smov 112   ;;  %s134_s17 = smov 96   ;;  %v105_v4 = vld [vmem:[%s207_s0 + $0xb] sm:$0x1]  }
   0x3   :  { %v106_v5 = vld [vmem:[%s207_s0 + $0xa] sm:$0x1]   ;;  %v2_v6 = vld [vmem:[%s207_s0] sm:$0x1]   ;;  %s135_s24 = smov 88   ;;  %s136_s25 = smov 80  }
   0x4   :  { %4 = vst.msk [vmem:[#allocation0] sm:$0x1] %vm3_vm0, %v2_v6   ;;  %v107_v7 = vld [vmem:[%s207_s0 + $0x9] sm:$0x1]   ;;  %v108_v8 = vld [vmem:[%s207_s0 + $0x8] sm:$0x1]  }
   0x5   :  { %s137_s30 = smov 72   ;;  %s138_s2 = smov 64   ;;  %v109_v9 = vld [vmem:[%s207_s0 + $0x7] sm:$0x1]   ;;  %v110_v10 = vld [vmem:[%s207_s0 + $0x6] sm:$0x1]  }
   0x6   :  { %13 = vrot.lane.b32.xlu0 %v102_v2, %s133_s16  ;;  %25 = vrot.lane.b32.xlu1 %v104_v3, %s134_s17  ;;  %s139_s7 = smov 56   ;;  %s140_s8 = smov 48   ;;  %v111_v11 = vld [vmem:[%s207_s0 + $0x5] sm:$0x1]   ;;  %v112_v12 = vld [vmem:[%s207_s0 + $0x4] sm:$0x1]  }
   0x7   :  { %s141_s13 = smov 40   ;;  %s142_s14 = smov 32   ;;  %v113_v13 = vld [vmem:[%s207_s0 + $0x3] sm:$0x1]   ;;  %v114_v14 = vld [vmem:[%s207_s0 + $0x2] sm:$0x1]  }
   0x8   :  { %s143_s19 = smov 24   ;;  %s144_s20 = smov 16   ;;  %v115_v15 = vld [vmem:[%s207_s0 + $0x1] sm:$0x1]   ;;  %vm27_vm4 = vcmask 851712   ;;  %vm33_vm5 = vcmask 786112  }
   0x9   :  { %s145_s0 = smov 8   ;;  %vm39_vm6 = vcmask 720512   ;;  %vm45_vm7 = vcmask 654912   ;;  %vm51_vm8 = vcmask 589312   ;;  %vm57_vm9 = vcmask 523712  }
   0xa   :  { %31 = vrot.lane.b32.xlu0 %v105_v4, %s135_s24  ;;  %37 = vrot.lane.b32.xlu1 %v106_v5, %s136_s25  ;;  %vm63_vm10 = vcmask 458112   ;;  %vm69_vm11 = vcmask 392512   ;;  %vm75_vm12 = vcmask 326912   ;;  %vm81_vm13 = vcmask 261312  }
   0xb   :  { %vm87_vm14 = vcmask 195712   ;;  %vm93_vm15 = vcmask 130112  }
   0xe   :  { %43 = vrot.lane.b32.xlu0 %v107_v7, %s137_s30  ;;  %49 = vrot.lane.b32.xlu1 %v108_v8, %s138_s2 }
  0x12   :  { %55 = vrot.lane.b32.xlu0 %v109_v9, %s139_s7  ;;  %61 = vrot.lane.b32.xlu1 %v110_v10, %s140_s8 }
  0x16   :  { %67 = vrot.lane.b32.xlu0 %v111_v11, %s141_s13  ;;  %73 = vrot.lane.b32.xlu1 %v112_v12, %s142_s14 }
  0x1a   :  { %79 = vrot.lane.b32.xlu0 %v113_v13, %s143_s19  ;;  %85 = vrot.lane.b32.xlu1 %v114_v14, %s144_s20 }
  0x1e   :  { %91 = vrot.lane.b32.xlu0 %v115_v15, %s145_s0 }
  0x74   :  { %v8_v16 = vpop.permute.xlu0 %7   ;;  %v20_v17 = vpop.permute.xlu1 %19  }
  0x75   :  { %10 = vst.msk [vmem:[#allocation0] sm:$0x1] %vm9_vm1, %v8_v16  }
  0x78   :  { %v14_v18 = vpop.permute.xlu0 %13   ;;  %v26_v19 = vpop.permute.xlu1 %25  }
  0x79   :  { %16 = vst.msk [vmem:[#allocation0] sm:$0x1] %vm15_vm2, %v14_v18  }
  0x7a   :  { %22 = vst.msk [vmem:[#allocation0] sm:$0x1] %vm21_vm3, %v20_v17  }
  0x7b   :  { %28 = vst.msk [vmem:[#allocation0] sm:$0x1] %vm27_vm4, %v26_v19  }
  0x7c   :  { %v32_v20 = vpop.permute.xlu0 %31   ;;  %v38_v21 = vpop.permute.xlu1 %37  }
  0x7d   :  { %34 = vst.msk [vmem:[#allocation0] sm:$0x1] %vm33_vm5, %v32_v20  }
  0x7e   :  { %40 = vst.msk [vmem:[#allocation0] sm:$0x1] %vm39_vm6, %v38_v21  }
  0x80   :  { %v44_v22 = vpop.permute.xlu0 %43   ;;  %v50_v23 = vpop.permute.xlu1 %49  }
  0x81   :  { %46 = vst.msk [vmem:[#allocation0] sm:$0x1] %vm45_vm7, %v44_v22  }
  0x82   :  { %52 = vst.msk [vmem:[#allocation0] sm:$0x1] %vm51_vm8, %v50_v23  }
  0x84   :  { %v56_v24 = vpop.permute.xlu0 %55   ;;  %v62_v25 = vpop.permute.xlu1 %61  }
  0x85   :  { %58 = vst.msk [vmem:[#allocation0] sm:$0x1] %vm57_vm9, %v56_v24  }
  0x86   :  { %64 = vst.msk [vmem:[#allocation0] sm:$0x1] %vm63_vm10, %v62_v25  }
  0x88   :  { %v68_v26 = vpop.permute.xlu0 %67   ;;  %v74_v27 = vpop.permute.xlu1 %73  }
  0x89   :  { %70 = vst.msk [vmem:[#allocation0] sm:$0x1] %vm69_vm11, %v68_v26  }
  0x8a   :  { %76 = vst.msk [vmem:[#allocation0] sm:$0x1] %vm75_vm12, %v74_v27  }
  0x8c   :  { %v80_v28 = vpop.permute.xlu0 %79   ;;  %v86_v29 = vpop.permute.xlu1 %85  }
  0x8d   :  { %82 = vst.msk [vmem:[#allocation0] sm:$0x1] %vm81_vm13, %v80_v28  }
  0x8e   :  { %88 = vst.msk [vmem:[#allocation0] sm:$0x1] %vm87_vm14, %v86_v29  }
  0x90   :  { %v92_v30 = vpop.permute.xlu0 %91  }
  0x91   :  { %94 = vst.msk [vmem:[#allocation0] sm:$0x1] %vm93_vm15, %v92_v30  }
  0x98   :  { %v98_v31 = vld [vmem:[#allocation0] sm:$0x1] }
  0x99   :  { %100 = vst [vmem:[%s208_s1] sm:$0x1] %v98_v31 }

// kernel: cross_conv2d.1
= control target key start
LH: loop header
LB: loop body
LE: loop exit
PB: predicated region body
PF: predicated region fallthrough
CT: control target
= control target key end

     0   :  { %s739_s12 = smov 0   ;;  %s858_s0 = inlined_call_operand.vmem [shape: f32[2,18,72], index: 0, kind: input, shape index: {}]   ;;  %s859_s1 = inlined_call_operand.vmem [shape: f32[3,72,128], index: 1, kind: input, shape index: {}]   ;;  %s860_s2 = inlined_call_operand.vmem [shape: f32[1,128], index: 2, kind: input, shape index: {}]   ;;  %s861_s3 = inlined_call_operand.vmem [shape: f32[2,16,128], index: 3, kind: output, shape index: {}]  }
   0x1 LB: > { %s518_s13 = sadd.s32 4294967295, %s717_s12   ;;  %p522_p0 = scmp.ge.s32.totalorder %s717_s12, 1  ;;  %s717_s12 = sphi %s739_s12, %s13_s12  }
   0x2   : > { %p137_p1 = scmp.lt.s32.totalorder %s717_s12, 3 }
   0x4   : > { %p138_p2 = pnand %p522_p0, %p137_p1 }
   0x5   : > { %v173_v0 = vld [vmem:[%s859_s1] sm:$0xff] (!%p138_p2)  ;;  %v174_v1 = vld [vmem:[%s859_s1 + $0x8] sm:$0xff] (!%p138_p2)  ;;  %v175_v2 = vld [vmem:[%s859_s1 + $0x10] sm:$0xff] (!%p138_p2)  ;;  %p161_p3 = scmp.lt.s32.totalorder (!%p138_p2), %s518_s13, 1  ;;  %vm194_vm0 = vcmask (!%p138_p2), 588800  }
   0x6   : > { %141 = sbr.rel (%p138_p2) target bundleno = 262 (0x106), region = 32  ;;  %v666_v3 = vpack.c.bf16 (!%p138_p2), %v174_v1, %v173_v0  ;;  %v176_v4 = vld [vmem:[%s859_s1 + $0x18] sm:$0xff] (!%p138_p2)  ;;  %v177_v6 = vld [vmem:[%s859_s1 + $0x20] sm:$0xff] (!%p138_p2)  ;;  %v178_v7 = vld [vmem:[%s859_s1 + $0x28] sm:$0xff] (!%p138_p2) }
   0x7   : > { %v670_v5 = vpack.c.bf16 (!%p138_p2), %v176_v4, %v175_v2  ;;  %v526_v8 = vld [vmem:[%s859_s1 + $0x48] sm:$0xff] (!%p138_p2)  ;;  %v527_v9 = vld [vmem:[%s859_s1 + $0x50] sm:$0xff] (!%p138_p2)  ;;  %v528_v11 = vld [vmem:[%s859_s1 + $0x58] sm:$0xff] (!%p138_p2)  ;;  %v674_v13 = vpack.c.bf16 (!%p138_p2), %v178_v7, %v177_v6 }
   0x8   : > { %667 = vmatprep.subr.bf16.mxu0 (!%p138_p2), %v666_v3  ;;  %v650_v10 = vpack.c.bf16 (!%p138_p2), %v527_v9, %v526_v8  ;;  %v529_v12 = vld [vmem:[%s859_s1 + $0x60] sm:$0xff] (!%p138_p2)  ;;  %v530_v15 = vld [vmem:[%s859_s1 + $0x68] sm:$0xff] (!%p138_p2)  ;;  %v179_v16 = vld [vmem:[%s859_s1 + $0x30] sm:$0xff] (!%p138_p2) }
   0x9   : > { %669 = vmatpush3.bf16.msra.mxu0 (!%p138_p2), %v666_v3  ;;  %v654_v14 = vpack.c.bf16 (!%p138_p2), %v529_v12, %v528_v11  ;;  %v180_v17 = vld [vmem:[%s859_s1 + $0x38] sm:$0xff] (!%p138_p2)  ;;  %v531_v18 = vld [vmem:[%s859_s1 + $0x70] sm:$0xff] (!%p138_p2)  ;;  %v533_v23 = vld [vmem:[%s859_s1 + $0x80] sm:$0xff] (!%p138_p2) }
   0xa   : > { %671 = vmatprep.subr.bf16.mxu0 (!%p138_p2), %v670_v5  ;;  %651 = vmatprep.subr.bf16.mxu1 (!%p138_p2), %v650_v10  ;;  %v658_v20 = vpack.c.bf16 (!%p138_p2), %v531_v18, %v530_v15  ;;  %v678_v21 = vpack.c.bf16 (!%p138_p2), %v180_v17, %v179_v16  ;;  %v532_v22 = vld [vmem:[%s859_s1 + $0x78] sm:$0xff] (!%p138_p2)  ;;  %v181_v26 = vld [vmem:[%s859_s1 + $0x40] sm:$0xff] (!%p138_p2)  ;;  %v539_v27 = vld [vmem:[%s859_s1 + $0x90] sm:$0xff] (!%p138_p2) }
   0xb   : > { %653 = vmatpush3.bf16.msra.mxu1 (!%p138_p2), %v650_v10  ;;  %v662_v25 = vpack.c.bf16 (!%p138_p2), %v533_v23, %v532_v22  ;;  %v540_v28 = vld [vmem:[%s859_s1 + $0x98] sm:$0xff] (!%p138_p2)  ;;  %v541_v29 = vld [vmem:[%s859_s1 + $0xa0] sm:$0xff] (!%p138_p2)  ;;  %v542_v30 = vld [vmem:[%s859_s1 + $0xa8] sm:$0xff] (!%p138_p2) }
   0xc   : > { %655 = vmatprep.subr.bf16.mxu1 (!%p138_p2), %v654_v14  ;;  %v682_v31 = vpack.c.bf16 (!%p138_p2), %v540_v28, %v539_v27  ;;  %v534_v32 = vld [vmem:[%s859_s1 + $0x88] sm:$0xff] (!%p138_p2)  ;;  %v686_v34 = vpack.c.bf16 (!%p138_p2), %v542_v30, %v541_v29  ;;  %v543_v36 = vld [vmem:[%s859_s1 + $0xb0] sm:$0xff] (!%p138_p2)  ;;  %v544_v37 = vld [vmem:[%s859_s1 + $0xb8] sm:$0xff] (!%p138_p2) }
   0xd   : > { %s863_s13 = smov (!%p161_p3, %s518_s13), 1  ;;  %673 = vmatpush3.bf16.msra.mxu0 %v670_v5  ;;  %v690_v39 = vpack.c.bf16 %v544_v37, %v543_v36  ;;  %v545_v40 = vld [vmem:[%s859_s1 + $0xc0] sm:$0xff]  ;;  %v546_v41 = vld [vmem:[%s859_s1 + $0xc8] sm:$0xff]  ;;  %v547_v43 = vld [vmem:[%s859_s1 + $0xd0] sm:$0xff] }
   0xe   : > { %s702_s30 = smul.u32 24, %s863_s13  ;;  %675 = vmatprep.subr.bf16.mxu0 %v674_v13  ;;  %v694_v42 = vpack.c.bf16 %v546_v41, %v545_v40  ;;  %s553_s23 = sshll.u32 %s863_s13, 4  ;;  %v550_v48 = vld [vmem:[%s860_s2] ss:$0 sm:$0xff] }
   0xf   : > { %657 = vmatpush3.bf16.msra.mxu1 %v654_v14  ;;  %s170_s28 = scalar_lea.vmem %s861_s3, %s553_s23 }
  0x10   : > { %s792_s18 = scalar_lea.vmem %s858_s0, %s702_s30  ;;  %659 = vmatprep.subr.bf16.mxu1 %v658_v20 }
  0x11   : > { %v171_v19 = vld [vmem:[%s792_s18] sm:$0xff]  ;;  %677 = vmatpush3.bf16.msra.mxu0 %v674_v13  ;;  %v172_v33 = vld [vmem:[%s792_s18 + $0x8] sm:$0xff] }
  0x12   : > { %626 = vmatprep.mubr.msk.f32.mxu0 %vm194_vm0, %v171_v19  ;;  %v182_v24 = vld [vmem:[%s792_s18 + $0x1] sm:$0xff]  ;;  %679 = vmatprep.subr.bf16.mxu0 %v678_v21  ;;  %v183_v38 = vld [vmem:[%s792_s18 + $0x9] sm:$0xff] }
  0x13   : > { %605 = vmatprep.mubr.msk.f32.mxu1 %vm194_vm0, %v182_v24  ;;  %661 = vmatpush3.bf16.msra.mxu1 %v658_v20  ;;  %v357_v35 = vld [vmem:[%s792_s18 + $0x2] sm:$0xff]  ;;  %v358_v44 = vld [vmem:[%s792_s18 + $0xa] sm:$0xff] }
  0x14   : > { %663 = vmatprep.subr.bf16.mxu1 %v662_v25 }
  0x15   : > { %681 = vmatpush3.bf16.msra.mxu0 %v678_v21 }
  0x16   : > { %624 = vmatprep.subr.mxu0 %v181_v26 }
  0x17   : > { %665 = vmatpush3.bf16.msra.mxu1 %v662_v25 }
  0x18   : > { %603 = vmatprep.subr.mxu1 %v534_v32 }
  0x19   : > { %625 = vmatpush3.msra.mxu0 %v181_v26 }
  0x1a   : > { %683 = vmatprep.subr.bf16.mxu0 %v682_v31  ;;  %627 = vmatmul.mubr.msk.f32.vlgmr.msra.gmra.mrb[0].mxu0 %vm194_vm0, %v172_v33 }
  0x1b   : > { %685 = vmatpush3.bf16.msra.mxu0 %v682_v31  ;;  %647 = vmatprep.mubr.msk.f32.mxu0 %vm194_vm0, %v357_v35 }
  0x1c   : > { %687 = vmatprep.subr.bf16.mxu0 %v686_v34  ;;  %604 = vmatpush3.msra.mxu1 %v534_v32 }
  0x1d   : > { %606 = vmatmul.mubr.msk.f32.vlgmr.msra.gmra.mrb[0].mxu1 %vm194_vm0, %v183_v38 }
  0x1f   : > { %689 = vmatpush3.bf16.msra.mxu0 %v686_v34 }
  0x20   : > { %691 = vmatprep.subr.bf16.mxu0 %v690_v39 }
  0x23   : > { %693 = vmatpush3.bf16.msra.mxu0 %v690_v39 }
  0x24   : > { %695 = vmatprep.subr.bf16.mxu0 %v694_v42 }
  0x27   : > { %697 = vmatpush3.bf16.msra.mxu0 %v694_v42 }
  0x28   : > { %645 = vmatprep.subr.mxu0 %v547_v43 }
  0x2b   : > { %646 = vmatpush3.msra.mxu0 %v547_v43 }
  0x2c   : > { %648 = vmatmul.mubr.msk.f32.vlgmr.msra.gmra.mrb[0].mxu0 %vm194_vm0, %v358_v44 }
  0xf0   : > { %v607_v45 = vpop.f32.mrb[0].mxu1 }
  0xf1   : > { %v267_v46 = vpop.f32.mrb[1].mxu1 }
  0xff   : > { %v649_v47 = vpop.f32.mrb[0].mxu0 }
 0x100   : > { %v698_v49 = vadd.f32 %v649_v47, %v607_v45  ;;  %v441_v50 = vpop.f32.mrb[1].mxu0 }
 0x101   : > { %v699_v51 = vadd.f32 %v441_v50, %v267_v46 }
 0x102   : > { %v460_v52 = vadd.f32 %v698_v49, %v550_v48 }
 0x103   : > { %v459_v53 = vadd.f32 %v699_v51, %v550_v48 }
 0x104   : > { %462 = vst [vmem:[%s170_s28 + $0x8] sm:$0xff] %v460_v52 }
 0x105   : > { %461 = vst [vmem:[%s170_s28] sm:$0xff] %v459_v53 }
 0x106 PF: > { %s13_s12 = sadd.s32 1, %s717_s12  }
 0x107   : > { %p10_p4 = scmp.ge.s32.totalorder %s13_s12, 4  }
 0x109   :  { %12 = sbr.rel (!%p10_p4) target bundleno = 1 (0x1), region = 64 }

</bundles_post_ra>
